<compile_context>
chip_gen: v7x
topology: tpu7x:2x2x1
jax: 0.10.0
libtpu: 0.0.40
codegen_flags: <defaults>
</compile_context>

<pallas_src>
import functools

import jax
import jax.numpy as jnp
from jax import lax
from jax.experimental import pallas as pl
from jax.experimental.pallas import tpu as pltpu


def pam_kernel(xq_ref, k_ref, v_ref, wq_ref, bq_ref, gamma_ref, out_ref,
               q_scratch, m_scratch, l_scratch, acc_scratch,
               *, n_valid, tile_k, kv_padded):
    # xq_ref:  (1, TQ, C)   f32   query-tile pixels (also the residual)
    # k_ref:   (1, TK, CQP) bf16  precomputed key tile (lane-padded channels)
    # v_ref:   (1, TK, C)   bf16  precomputed value tile
    # wq_ref:  (C, CQP)     bf16  bq_ref: (1, CQP) f32  (zero padded past Cq)
    # gamma:   (1, 1)       f32 in SMEM
    ki = pl.program_id(2)
    n_kv = pl.num_programs(2)

    @pl.when(ki == 0)
    def _init():
        xq = xq_ref[0].astype(jnp.bfloat16)                           # (TQ, C)
        q = jnp.dot(xq, wq_ref[...],
                    preferred_element_type=jnp.float32) + bq_ref[...]
        q_scratch[...] = q.astype(jnp.bfloat16)                       # (TQ, CQP)
        m_scratch[...] = jnp.full_like(m_scratch, -jnp.inf)
        l_scratch[...] = jnp.zeros_like(l_scratch)
        acc_scratch[...] = jnp.zeros_like(acc_scratch)

    k = k_ref[0]                                                      # (TK, CQP)
    v = v_ref[0]                                                      # (TK, C)

    # energy tile: contract the padded channel dim of q and k directly
    # (NT matmul, no explicit transpose / relayout).
    s = lax.dot_general(q_scratch[...], k,
                        dimension_numbers=(((1,), (1,)), ((), ())),
                        preferred_element_type=jnp.float32)           # (TQ, TK)

    if kv_padded:
        # Mask KV columns past the real sequence length (only the last KV tile
        # actually contains padding; the compare/select is cheap VPU work).
        col = ki * tile_k + lax.broadcasted_iota(jnp.int32, s.shape, 1)
        s = jnp.where(col < n_valid, s, -jnp.inf)

    # online softmax update (statistics in f32)
    m_prev = m_scratch[...]                                           # (TQ, 1)
    m_new = jnp.maximum(m_prev, jnp.max(s, axis=-1, keepdims=True))
    alpha = jnp.exp(m_prev - m_new)
    p = jnp.exp(s - m_new)                                            # (TQ, TK)
    l_scratch[...] = alpha * l_scratch[...] + jnp.sum(p, axis=-1, keepdims=True)
    acc_scratch[...] = alpha * acc_scratch[...] + jnp.dot(
        p.astype(jnp.bfloat16), v, preferred_element_type=jnp.float32)
    m_scratch[...] = m_new

    @pl.when(ki == n_kv - 1)
    def _finalize():
        inv_l = pl.reciprocal(l_scratch[...], approx=False)
        out = acc_scratch[...] * inv_l                                # (TQ, C)
        gamma = gamma_ref[0, 0]
        out_ref[0] = (gamma * out + xq_ref[0]).astype(out_ref.dtype)


def _round_up(x, m):
    return ((x + m - 1) // m) * m


def pam_forward(x, wq, bq, wk, bk, wv, bv, gamma, *, tq=512, tk=256):
    """x: (B, C, H, W) f32.  wq/wk: (C//8, C), wv: (C, C), gamma: (1,)."""
    B, C, H, W = x.shape
    N = H * W
    Cq = wq.shape[0]
    CQP = _round_up(Cq, 128)                     # pad q/k channels to 128 lanes

    # Tile sizes: multiples of 16 (bf16 sublane packing); TQ is a multiple of
    # TK so the padded query/KV lengths are each multiples of their tile.
    TK = min(tk, _round_up(N, 16))
    TQ = min(tq, _round_up(N, TK))
    NPQ = _round_up(N, TQ)                       # padded query length
    NPK = _round_up(N, TK)                       # padded KV length

    # TODO(synk): keep a (B, N, C) layout end-to-end to avoid these transposes.
    x_flat = jnp.transpose(x.reshape(B, C, N), (0, 2, 1))             # (B, N, C)

    # ---- hoisted projections: K and V are computed once per batch ----------
    wk_p = jnp.pad(wk.T, ((0, 0), (0, CQP - Cq))).astype(jnp.float32)  # (C, CQP)
    bk_p = jnp.pad(bk, (0, CQP - Cq)).astype(jnp.float32)              # (CQP,)
    k_all = (jnp.einsum('bnc,cd->bnd', x_flat, wk_p)
             + bk_p).astype(jnp.bfloat16)                              # (B, N, CQP)
    v_all = (jnp.einsum('bnc,cd->bnd', x_flat, wv.T.astype(jnp.float32))
             + bv.astype(jnp.float32)).astype(jnp.bfloat16)            # (B, N, C)

    # Q projection stays in-kernel (computed once per query tile, no extra HBM).
    wq_p = jnp.pad(wq.T, ((0, 0), (0, CQP - Cq))).astype(jnp.bfloat16)  # (C, CQP)
    bq_p = jnp.pad(bq, (0, CQP - Cq)).reshape(1, CQP).astype(jnp.float32)

    # ---- pad the pixel axis to tile multiples -------------------------------
    xq_in = jnp.pad(x_flat, ((0, 0), (0, NPQ - N), (0, 0)))
    k_in = jnp.pad(k_all, ((0, 0), (0, NPK - N), (0, 0)))
    v_in = jnp.pad(v_all, ((0, 0), (0, NPK - N), (0, 0)))

    grid = (B, NPQ // TQ, NPK // TK)

    kernel = functools.partial(pam_kernel, n_valid=N, tile_k=TK,
                               kv_padded=(NPK != N))

    out_flat = pl.pallas_call(
        kernel,
        out_shape=jax.ShapeDtypeStruct((B, NPQ, C), x.dtype),
        grid=grid,
        in_specs=[
            pl.BlockSpec((1, TQ, C), lambda b, qi, ki: (b, qi, 0)),    # x (query / residual)
            pl.BlockSpec((1, TK, CQP), lambda b, qi, ki: (b, ki, 0)),  # K tile (bf16)
            pl.BlockSpec((1, TK, C), lambda b, qi, ki: (b, ki, 0)),    # V tile (bf16)
            pl.BlockSpec((C, CQP), lambda b, qi, ki: (0, 0)),          # Wq^T (padded)
            pl.BlockSpec((1, CQP), lambda b, qi, ki: (0, 0)),          # bq
            pl.BlockSpec(memory_space=pltpu.MemorySpace.SMEM),         # gamma
        ],
        out_specs=pl.BlockSpec((1, TQ, C), lambda b, qi, ki: (b, qi, 0)),
        scratch_shapes=[
            pltpu.VMEM((TQ, CQP), jnp.bfloat16),   # cached q tile
            pltpu.VMEM((TQ, 1), jnp.float32),      # running max
            pltpu.VMEM((TQ, 1), jnp.float32),      # running denom
            pltpu.VMEM((TQ, C), jnp.float32),      # output accumulator
        ],
        compiler_params=pltpu.CompilerParams(
            dimension_semantics=("parallel", "parallel", "arbitrary"),
            vmem_limit_bytes=48 * 1024 * 1024),    # fits v7x's 64 MiB/TC
    )(xq_in, k_in, v_in, wq_p, bq_p, gamma.reshape(1, 1).astype(jnp.float32))

    out_flat = out_flat[:, :N, :]
    return jnp.transpose(out_flat, (0, 2, 1)).reshape(B, C, H, W)


def pam_reference(x, wq, bq, wk, bk, wv, bv, gamma):
    """Plain-JAX f32 reference mirroring the PyTorch forward exactly."""
    B, C, H, W = x.shape
    N = H * W

    def conv1x1(xx, w, b):
        return jnp.einsum('bchw,oc->bohw', xx, w) + b[None, :, None, None]

    q = conv1x1(x, wq, bq).reshape(B, -1, N).transpose(0, 2, 1)       # (B, N, Cq)
    k = conv1x1(x, wk, bk).reshape(B, -1, N)                          # (B, Cq, N)
    energy = jnp.einsum('bnc,bcm->bnm', q, k)                         # (B, N, N)
    attn = jax.nn.softmax(energy, axis=-1)
    v = conv1x1(x, wv, bv).reshape(B, -1, N)                          # (B, C, N)
    out = jnp.einsum('bcn,bmn->bcm', v, attn).reshape(B, C, H, W)
    return gamma[0] * out + x


def _run_case(key, B, C, H, W):
    Cq = C // 8
    kx, kq, kbq, kk, kbk, kv, kbv = jax.random.split(key, 7)
    x = jax.random.normal(kx, (B, C, H, W), dtype=jnp.float32)
    wq = jax.random.normal(kq, (Cq, C), dtype=jnp.float32) * 0.1
    bq = jax.random.normal(kbq, (Cq,), dtype=jnp.float32) * 0.1
    wk = jax.random.normal(kk, (Cq, C), dtype=jnp.float32) * 0.1
    bk = jax.random.normal(kbk, (Cq,), dtype=jnp.float32) * 0.1
    wv = jax.random.normal(kv, (C, C), dtype=jnp.float32) * 0.1
    bv = jax.random.normal(kbv, (C,), dtype=jnp.float32) * 0.1
    # PyTorch inits gamma to 0 (output == x); use a non-zero deterministic
    # value so the attention path actually contributes to the result.
    gamma = jnp.array([0.5], dtype=jnp.float32)

    out = jax.block_until_ready(pam_forward(x, wq, bq, wk, bk, wv, bv, gamma))
    ref = pam_reference(x, wq, bq, wk, bk, wv, bv, gamma)
    assert out.shape == (B, C, H, W)
    # bf16 MXU operands -> loosened tolerance vs the f32 reference
    # (intentional precision trade-off).
    assert jnp.allclose(out, ref, atol=2e-2, rtol=2e-2), "mismatch vs reference"


if __name__ == "__main__":
    key = jax.random.PRNGKey(0)
    k1, k2 = jax.random.split(key)

    # Case 1: N divides the tile exactly (no padding path).
    _run_case(k1, B=2, C=16, H=8, W=8)          # in_dim=16 -> query channels 2
    # Case 2: awkward spatial size -> exercises the pad + KV-mask path.
    _run_case(k2, B=2, C=16, H=7, W=9)

    print("KERNEL_OK")
</pallas_src>

<mosaic_0001>
module attributes {stable_mosaic.version = 11 : i64} {
  func.func @pam_kernel(%arg0: i32, %arg1: i32, %arg2: i32, %arg3: memref<1x64x16xf32, #tpu.memory_space<vmem>>, %arg4: memref<1x64x128xbf16, #tpu.memory_space<vmem>>, %arg5: memref<1x64x16xbf16, #tpu.memory_space<vmem>>, %arg6: memref<16x128xbf16, #tpu.memory_space<vmem>>, %arg7: memref<1x128xf32, #tpu.memory_space<vmem>>, %arg8: memref<1x1xf32, #tpu.memory_space<smem>>, %arg9: memref<1x64x16xf32, #tpu.memory_space<vmem>>, %arg10: memref<64x128xbf16, #tpu.memory_space<vmem>>, %arg11: memref<64x1xf32, #tpu.memory_space<vmem>>, %arg12: memref<64x1xf32, #tpu.memory_space<vmem>>, %arg13: memref<64x16xf32, #tpu.memory_space<vmem>>) attributes {dimension_semantics = [#tpu.dimension_semantics<parallel>, #tpu.dimension_semantics<parallel>, #tpu.dimension_semantics<arbitrary>], iteration_bounds = array<i64: 2, 1, 1>, scalar_prefetch = 0 : i64, scratch_operands = 4 : i64, tpu.core_type = #tpu.core_type<tc>, window_params = [{transform_indices = @transform_0, window_bounds = array<i64: 1, 64, 16>}, {transform_indices = @transform_1, window_bounds = array<i64: 1, 64, 128>}, {transform_indices = @transform_2, window_bounds = array<i64: 1, 64, 16>}, {pipeline_mode = #tpu.pipeline_mode<synchronous>, transform_indices = @transform_3, window_bounds = array<i64: 16, 128>}, {pipeline_mode = #tpu.pipeline_mode<synchronous>, transform_indices = @transform_4, window_bounds = array<i64: 1, 128>}, {transform_indices = @transform_5, window_bounds = array<i64: 1, 1>}, {transform_indices = @transform_6, window_bounds = array<i64: 1, 64, 16>}]} {
    %c0_i32 = arith.constant 0 : i32
    %0 = arith.cmpi eq, %arg2, %c0_i32 : i32
    %1 = arith.extui %0 : i1 to i32
    %c0_i32_0 = arith.constant 0 : i32
    %2 = arith.cmpi ne, %1, %c0_i32_0 : i32
    scf.if %2 {
      %c0_25 = arith.constant 0 : index
      %c0_26 = arith.constant 0 : index
      %c0_27 = arith.constant 0 : index
      %35 = vector.load %arg3[%c0_25, %c0_26, %c0_27] : memref<1x64x16xf32, #tpu.memory_space<vmem>>, vector<1x64x16xf32>
      %36 = vector.shape_cast %35 : vector<1x64x16xf32> to vector<64x16xf32>
      %37 = arith.truncf %36 : vector<64x16xf32> to vector<64x16xbf16>
      %c0_28 = arith.constant 0 : index
      %c0_29 = arith.constant 0 : index
      %38 = vector.load %arg6[%c0_28, %c0_29] : memref<16x128xbf16, #tpu.memory_space<vmem>>, vector<16x128xbf16>
      %cst_30 = arith.constant dense<0.000000e+00> : vector<64x128xf32>
      %39 = tpu.matmul %37, %38, %cst_30 {dimension_numbers = #tpu.dot_dimension_numbers<[1], [0], [0], [1], [0, 0, 1, 1], [], []>} : vector<64x16xbf16>, vector<16x128xbf16>, vector<64x128xf32> -> vector<64x128xf32>
      %c0_31 = arith.constant 0 : index
      %c0_32 = arith.constant 0 : index
      %40 = vector.load %arg7[%c0_31, %c0_32] : memref<1x128xf32, #tpu.memory_space<vmem>>, vector<1x128xf32>
      %41 = vector.broadcast %40 : vector<1x128xf32> to vector<64x128xf32>
      %42 = arith.addf %39, %41 : vector<64x128xf32>
      %43 = arith.truncf %42 : vector<64x128xf32> to vector<64x128xbf16>
      %c0_33 = arith.constant 0 : index
      %c0_34 = arith.constant 0 : index
      %44 = vector.load %arg10[%c0_33, %c0_34] : memref<64x128xbf16, #tpu.memory_space<vmem>>, vector<64x128xbf16>
      tpu.vector_store %arg10[%c0_33, %c0_34], %43 {strides = array<i32>} : memref<64x128xbf16, #tpu.memory_space<vmem>>, vector<64x128xbf16>,
      %cst_35 = arith.constant 0xFF800000 : f32
      %45 = vector.broadcast %cst_35 : f32 to vector<64x1xf32>
      %c0_36 = arith.constant 0 : index
      %c0_37 = arith.constant 0 : index
      %46 = vector.load %arg11[%c0_36, %c0_37] : memref<64x1xf32, #tpu.memory_space<vmem>>, vector<64x1xf32>
      tpu.vector_store %arg11[%c0_36, %c0_37], %45 {strides = array<i32>} : memref<64x1xf32, #tpu.memory_space<vmem>>, vector<64x1xf32>,
      %cst_38 = arith.constant 0.000000e+00 : f32
      %47 = vector.broadcast %cst_38 : f32 to vector<64x1xf32>
      %c0_39 = arith.constant 0 : index
      %c0_40 = arith.constant 0 : index
      %48 = vector.load %arg12[%c0_39, %c0_40] : memref<64x1xf32, #tpu.memory_space<vmem>>, vector<64x1xf32>
      tpu.vector_store %arg12[%c0_39, %c0_40], %47 {strides = array<i32>} : memref<64x1xf32, #tpu.memory_space<vmem>>, vector<64x1xf32>,
      %cst_41 = arith.constant 0.000000e+00 : f32
      %49 = vector.broadcast %cst_41 : f32 to vector<64x16xf32>
      %c0_42 = arith.constant 0 : index
      %c0_43 = arith.constant 0 : index
      %50 = vector.load %arg13[%c0_42, %c0_43] : memref<64x16xf32, #tpu.memory_space<vmem>>, vector<64x16xf32>
      tpu.vector_store %arg13[%c0_42, %c0_43], %49 {strides = array<i32>} : memref<64x16xf32, #tpu.memory_space<vmem>>, vector<64x16xf32>,
    } else {
    }
    %c0 = arith.constant 0 : index
    %c0_1 = arith.constant 0 : index
    %c0_2 = arith.constant 0 : index
    %3 = vector.load %arg4[%c0, %c0_1, %c0_2] : memref<1x64x128xbf16, #tpu.memory_space<vmem>>, vector<1x64x128xbf16>
    %4 = vector.shape_cast %3 : vector<1x64x128xbf16> to vector<64x128xbf16>
    %c0_3 = arith.constant 0 : index
    %c0_4 = arith.constant 0 : index
    %c0_5 = arith.constant 0 : index
    %5 = vector.load %arg5[%c0_3, %c0_4, %c0_5] : memref<1x64x16xbf16, #tpu.memory_space<vmem>>, vector<1x64x16xbf16>
    %6 = vector.shape_cast %5 : vector<1x64x16xbf16> to vector<64x16xbf16>
    %c0_6 = arith.constant 0 : index
    %c0_7 = arith.constant 0 : index
    %7 = vector.load %arg10[%c0_6, %c0_7] : memref<64x128xbf16, #tpu.memory_space<vmem>>, vector<64x128xbf16>
    %cst = arith.constant dense<0.000000e+00> : vector<64x64xf32>
    %8 = tpu.matmul %7, %4, %cst {dimension_numbers = #tpu.dot_dimension_numbers<[1], [1], [0], [0], [0, 0, 1, 0], [], []>} : vector<64x128xbf16>, vector<64x128xbf16>, vector<64x64xf32> -> vector<64x64xf32>
    %c0_8 = arith.constant 0 : index
    %c0_9 = arith.constant 0 : index
    %9 = vector.load %arg11[%c0_8, %c0_9] : memref<64x1xf32, #tpu.memory_space<vmem>>, vector<64x1xf32>
    %cst_10 = arith.constant dense<0xFF800000> : vector<64xf32>
    %10 = vector.multi_reduction <maximumf>, %8, %cst_10 [1] : vector<64x64xf32> to vector<64xf32>
    %11 = vector.shape_cast %10 : vector<64xf32> to vector<64x1xf32>
    %12 = arith.maximumf %9, %11 : vector<64x1xf32>
    %13 = arith.subf %9, %12 : vector<64x1xf32>
    %14 = math.exp %13 : vector<64x1xf32>
    %15 = vector.broadcast %12 : vector<64x1xf32> to vector<64x64xf32>
    %16 = arith.subf %8, %15 : vector<64x64xf32>
    %17 = math.exp %16 : vector<64x64xf32>
    %c0_11 = arith.constant 0 : index
    %c0_12 = arith.constant 0 : index
    %18 = vector.load %arg12[%c0_11, %c0_12] : memref<64x1xf32, #tpu.memory_space<vmem>>, vector<64x1xf32>
    %19 = arith.mulf %14, %18 : vector<64x1xf32>
    %cst_13 = arith.constant dense<0.000000e+00> : vector<64xf32>
    %20 = vector.multi_reduction <add>, %17, %cst_13 [1] : vector<64x64xf32> to vector<64xf32>
    %21 = vector.shape_cast %20 : vector<64xf32> to vector<64x1xf32>
    %22 = arith.addf %19, %21 : vector<64x1xf32>
    %c0_14 = arith.constant 0 : index
    %c0_15 = arith.constant 0 : index
    %23 = vector.load %arg12[%c0_14, %c0_15] : memref<64x1xf32, #tpu.memory_space<vmem>>, vector<64x1xf32>
    tpu.vector_store %arg12[%c0_14, %c0_15], %22 {strides = array<i32>} : memref<64x1xf32, #tpu.memory_space<vmem>>, vector<64x1xf32>,
    %c0_16 = arith.constant 0 : index
    %c0_17 = arith.constant 0 : index
    %24 = vector.load %arg13[%c0_16, %c0_17] : memref<64x16xf32, #tpu.memory_space<vmem>>, vector<64x16xf32>
    %25 = vector.broadcast %14 : vector<64x1xf32> to vector<64x16xf32>
    %26 = arith.mulf %25, %24 : vector<64x16xf32>
    %27 = arith.truncf %17 : vector<64x64xf32> to vector<64x64xbf16>
    %cst_18 = arith.constant dense<0.000000e+00> : vector<64x16xf32>
    %28 = tpu.matmul %27, %6, %cst_18 {dimension_numbers = #tpu.dot_dimension_numbers<[1], [0], [0], [1], [0, 0, 1, 1], [], []>} : vector<64x64xbf16>, vector<64x16xbf16>, vector<64x16xf32> -> vector<64x16xf32>
    %29 = arith.addf %26, %28 : vector<64x16xf32>
    %c0_19 = arith.constant 0 : index
    %c0_20 = arith.constant 0 : index
    %30 = vector.load %arg13[%c0_19, %c0_20] : memref<64x16xf32, #tpu.memory_space<vmem>>, vector<64x16xf32>
    tpu.vector_store %arg13[%c0_19, %c0_20], %29 {strides = array<i32>} : memref<64x16xf32, #tpu.memory_space<vmem>>, vector<64x16xf32>,
    %c0_21 = arith.constant 0 : index
    %c0_22 = arith.constant 0 : index
    %31 = vector.load %arg11[%c0_21, %c0_22] : memref<64x1xf32, #tpu.memory_space<vmem>>, vector<64x1xf32>
    tpu.vector_store %arg11[%c0_21, %c0_22], %12 {strides = array<i32>} : memref<64x1xf32, #tpu.memory_space<vmem>>, vector<64x1xf32>,
    %c0_i32_23 = arith.constant 0 : i32
    %32 = arith.cmpi eq, %arg2, %c0_i32_23 : i32
    %33 = arith.extui %32 : i1 to i32
    %c0_i32_24 = arith.constant 0 : i32
    %34 = arith.cmpi ne, %33, %c0_i32_24 : i32
    scf.if %34 {
      %c0_25 = arith.constant 0 : index
      %c0_26 = arith.constant 0 : index
      %35 = vector.load %arg12[%c0_25, %c0_26] : memref<64x1xf32, #tpu.memory_space<vmem>>, vector<64x1xf32>
      %36 = tpu.reciprocal %35 : vector<64x1xf32> -> vector<64x1xf32>
      %c0_27 = arith.constant 0 : index
      %c0_28 = arith.constant 0 : index
      %37 = vector.load %arg13[%c0_27, %c0_28] : memref<64x16xf32, #tpu.memory_space<vmem>>, vector<64x16xf32>
      %38 = vector.broadcast %36 : vector<64x1xf32> to vector<64x16xf32>
      %39 = arith.mulf %37, %38 : vector<64x16xf32>
      %c0_29 = arith.constant 0 : index
      %c0_30 = arith.constant 0 : index
      %40 = memref.load %arg8[%c0_29, %c0_30] : memref<1x1xf32, #tpu.memory_space<smem>>
      %41 = vector.broadcast %40 : f32 to vector<64x16xf32>
      %42 = arith.mulf %41, %39 : vector<64x16xf32>
      %c0_31 = arith.constant 0 : index
      %c0_32 = arith.constant 0 : index
      %c0_33 = arith.constant 0 : index
      %43 = vector.load %arg3[%c0_31, %c0_32, %c0_33] : memref<1x64x16xf32, #tpu.memory_space<vmem>>, vector<1x64x16xf32>
      %44 = vector.shape_cast %43 : vector<1x64x16xf32> to vector<64x16xf32>
      %45 = arith.addf %42, %44 : vector<64x16xf32>
      %c0_34 = arith.constant 0 : index
      %c0_35 = arith.constant 0 : index
      %c0_36 = arith.constant 0 : index
      %46 = vector.load %arg9[%c0_34, %c0_35, %c0_36] : memref<1x64x16xf32, #tpu.memory_space<vmem>>, vector<1x64x16xf32>
      %47 = vector.shape_cast %46 : vector<1x64x16xf32> to vector<64x16xf32>
      %48 = vector.shape_cast %45 : vector<64x16xf32> to vector<1x64x16xf32>
      tpu.vector_store %arg9[%c0_34, %c0_35, %c0_36], %48 {strides = array<i32>} : memref<1x64x16xf32, #tpu.memory_space<vmem>>, vector<1x64x16xf32>,
    } else {
    }
    return
  }
  func.func @transform_0(%arg0: i32, %arg1: i32, %arg2: i32) -> (i32, i32, i32) {
    %c0_i32 = arith.constant 0 : i32
    %c0_i32_0 = arith.constant 0 : i32
    return %arg0, %arg1, %c0_i32 : i32, i32, i32
  }
  func.func @transform_1(%arg0: i32, %arg1: i32, %arg2: i32) -> (i32, i32, i32) {
    %c0_i32 = arith.constant 0 : i32
    %c0_i32_0 = arith.constant 0 : i32
    return %arg0, %arg2, %c0_i32 : i32, i32, i32
  }
  func.func @transform_2(%arg0: i32, %arg1: i32, %arg2: i32) -> (i32, i32, i32) {
    %c0_i32 = arith.constant 0 : i32
    %c0_i32_0 = arith.constant 0 : i32
    return %arg0, %arg2, %c0_i32 : i32, i32, i32
  }
  func.func @transform_3(%arg0: i32, %arg1: i32, %arg2: i32) -> (i32, i32) {
    %c0_i32 = arith.constant 0 : i32
    %c0_i32_0 = arith.constant 0 : i32
    %c0_i32_1 = arith.constant 0 : i32
    return %c0_i32, %c0_i32_0 : i32, i32
  }
  func.func @transform_4(%arg0: i32, %arg1: i32, %arg2: i32) -> (i32, i32) {
    %c0_i32 = arith.constant 0 : i32
    %c0_i32_0 = arith.constant 0 : i32
    %c0_i32_1 = arith.constant 0 : i32
    return %c0_i32, %c0_i32_0 : i32, i32
  }
  func.func @transform_5(%arg0: i32, %arg1: i32, %arg2: i32) -> (i32, i32) {
    %c0_i32 = arith.constant 0 : i32
    %c0_i32_0 = arith.constant 0 : i32
    %c0_i32_1 = arith.constant 0 : i32
    return %c0_i32, %c0_i32_0 : i32, i32
  }
  func.func @transform_6(%arg0: i32, %arg1: i32, %arg2: i32) -> (i32, i32, i32) {
    %c0_i32 = arith.constant 0 : i32
    %c0_i32_0 = arith.constant 0 : i32
    return %arg0, %arg1, %c0_i32 : i32, i32, i32
  }
}

</mosaic_0001>

<bundles_post_ra>
// kernel: tpu_custom_call.1
= control target key start
LH: loop header
LB: loop body
LE: loop exit
PB: predicated region body
PF: predicated region fallthrough
CT: control target
= control target key end

     0   :  { %s1481_s23 = smov 0   ;;  %s1483_s24 = smov 0   ;;  %s1790_s0 = inlined_call_operand.vmem [shape: f32[2,64,16], index: 0, kind: input, shape index: {}]   ;;  %s1791_s1 = inlined_call_operand.vmem [shape: bf16[2,64,128], index: 1, kind: input, shape index: {}]   ;;  %s1792_s2 = inlined_call_operand.vmem [shape: bf16[2,64,16], index: 2, kind: input, shape index: {}]   ;;  %s1793_s3 = inlined_call_operand.vmem [shape: bf16[16,128], index: 3, kind: input, shape index: {}]   ;;  %s1794_s4 = inlined_call_operand.vmem [shape: f32[1,128], index: 4, kind: input, shape index: {}]   ;;  %s1795_s5 = inlined_call_operand.<no memory space> [shape: f32[1,1], index: 5, kind: input, shape index: {}]   ;;  %s1796_s6 = inlined_call_operand.vmem [shape: f32[2,64,16], index: 6, kind: output, shape index: {}]  }
   0x1   :  { %11 = sst [smem:[#allocation6]] %s1795_s5  ;;  %s1485_s25 = smov 0  }
   0x2 LB: > { %s36_s5 = sadd.s32 1, %s1434_s24  ;;  %p1234_p0 = scmp.ge.s32.totalorder %s1438_s25, 1  ;;  %s1438_s25 = sphi %s1485_s25, %s17_s25   ;;  %s1434_s24 = sphi %s1483_s24, %s1798_s24   ;;  %s1430_s23 = sphi %s1481_s23, %s1797_s23  }
   0x3   : > { %p38_p1 = scmp.ge.s32.totalorder %s36_s5, 2  ;;  %p275_p2 = scmp.lt.s32.totalorder %s1438_s25, 3 }
   0x5   : > { %s1800_s5 = smov (%p38_p1, %s36_s5), 0  ;;  %p276_p3 = pnand %p1234_p0, %p275_p2 }
   0x6   : > { %v1359_v0 = vld [vmem:[%s1793_s3] sm:$0xff] (!%p276_p3)   ;;  %p332_p4 = scmp.lt.s32.totalorder (!%p276_p3), %s1430_s23, 1  ;;  %vm403_vm0 = vcmask (!%p276_p3), 130048   ;;  %vm489_vm1 = vcmask (!%p276_p3), 7168   ;;  %v1440_v38 = vmov (!%p276_p3), -inf   ;;  %vm631_vm2 = vcmask (!%p276_p3), 523264  }
   0x7   : > { %279 = sbr.rel (%p276_p3) target bundleno = 1066 (0x42a), region = 44  ;;  %1288 = vmatprep.subr.bf16.mxu0 (!%p276_p3), %v1359_v0  ;;  %v1243_v18 = vld [vmem:[%s1794_s4] ss:$0 sm:$0xff] (!%p276_p3)  ;;  %492 = vst.msk [vmem:[#allocation3 + $0x10] sm:$0xff] (!%p276_p3), %vm489_vm1, %v1440_v38  ;;  %490 = vst.msk [vmem:[#allocation3] sm:$0xff] (!%p276_p3), %vm489_vm1, %v1440_v38  ;;  %v1441_v55 = vmov (!%p276_p3), 0  }
   0x8   : > { %1289 = vmatpush3.bf16.msra.mxu0 (!%p276_p3), %v1359_v0  ;;  %491 = vst.msk [vmem:[#allocation3 + $0x8] sm:$0xff] (!%p276_p3), %vm489_vm1, %v1440_v38  ;;  %493 = vst.msk [vmem:[#allocation3 + $0x18] sm:$0xff] (!%p276_p3), %vm489_vm1, %v1440_v38  ;;  %1357 = vset.pattern.permute.xlu0 (!%p276_p3), %v1441_v55  ;;  %v1442_v56 = vmov (!%p276_p3), 0.0   ;;  %s1070_s17 = sld [smem:[#allocation6]] (!%p276_p3) }
   0x9   : > { %494 = vst.msk [vmem:[#allocation3 + $0x20] sm:$0xff] (!%p276_p3), %vm489_vm1, %v1440_v38  ;;  %495 = vst.msk [vmem:[#allocation3 + $0x28] sm:$0xff] (!%p276_p3), %vm489_vm1, %v1440_v38  ;;  %1358 = vset.pattern.permute.xlu1 (!%p276_p3), %v1441_v55 }
   0xa   : > { %496 = vst.msk [vmem:[#allocation3 + $0x30] sm:$0xff] (!%p276_p3), %vm489_vm1, %v1440_v38  ;;  %497 = vst.msk [vmem:[#allocation3 + $0x38] sm:$0xff] (!%p276_p3), %vm489_vm1, %v1440_v38 }
   0xb   : > { %500 = vst.msk [vmem:[#allocation4 + $0x10] sm:$0xff] (!%p276_p3), %vm489_vm1, %v1442_v56  ;;  %498 = vst.msk [vmem:[#allocation4] sm:$0xff] (!%p276_p3), %vm489_vm1, %v1442_v56 }
   0xc   : > { %499 = vst.msk [vmem:[#allocation4 + $0x8] sm:$0xff] (!%p276_p3), %vm489_vm1, %v1442_v56  ;;  %501 = vst.msk [vmem:[#allocation4 + $0x18] sm:$0xff] (!%p276_p3), %vm489_vm1, %v1442_v56 }
   0xd   : > { %502 = vst.msk [vmem:[#allocation4 + $0x20] sm:$0xff] (!%p276_p3), %vm489_vm1, %v1442_v56  ;;  %503 = vst.msk [vmem:[#allocation4 + $0x28] sm:$0xff] (!%p276_p3), %vm489_vm1, %v1442_v56 }
   0xe   : > { %s1802_s23 = smov (!%p332_p4, %s1430_s23), 1  ;;  %504 = vst.msk [vmem:[#allocation4 + $0x30] sm:$0xff] %vm489_vm1, %v1442_v56  ;;  %505 = vst.msk [vmem:[#allocation4 + $0x38] sm:$0xff] %vm489_vm1, %v1442_v56  ;;  %v1606_v57 = vld [vmem:[#allocation3 + $0x10] sm:$0xff]  ;;  %v1608_v58 = vld [vmem:[#allocation3] sm:$0xff] }
   0xf   : > { %s1263_s28 = sshll.u32 %s1802_s23, 6  ;;  %s1264_s29 = sshll.u32 %s1802_s23, 5  ;;  %506 = vst.msk [vmem:[#allocation5] sm:$0xff] %vm403_vm0, %v1442_v56  ;;  %507 = vst.msk [vmem:[#allocation5 + $0x8] sm:$0xff] %vm403_vm0, %v1442_v56  ;;  %v1616_v63 = vld [vmem:[#allocation3 + $0x18] sm:$0xff] }
  0x10   : > { %s339_s8 = scalar_lea.vmem %s1790_s0, %s1263_s28  ;;  %s349_s11 = scalar_lea.vmem %s1791_s1, %s1264_s29  ;;  %508 = vst.msk [vmem:[#allocation5 + $0x10] sm:$0xff] %vm403_vm0, %v1442_v56  ;;  %509 = vst.msk [vmem:[#allocation5 + $0x18] sm:$0xff] %vm403_vm0, %v1442_v56 }
  0x11   : > { %v1511_v1 = vld [vmem:[%s339_s8] sm:$0xff]  ;;  %v1513_v2 = vld [vmem:[%s339_s8 + $0x8] sm:$0xff]  ;;  %v1515_v3 = vld [vmem:[%s339_s8 + $0x10] sm:$0xff]  ;;  %s1542_s14 = scalar_lea.vmem %s1792_s2, %s1264_s29  ;;  %510 = vst.msk [vmem:[#allocation5 + $0x20] sm:$0xff] %vm403_vm0, %v1442_v56  ;;  %s1755_s20 = scalar_lea.vmem %s1796_s6, %s1263_s28 }
  0x12   : > { %v384_v4 = vpack.c.bf16 %v1513_v2, %v1511_v1  ;;  %v1522_v5 = vld [vmem:[%s339_s8 + $0x18] sm:$0xff]  ;;  %v1524_v6 = vld [vmem:[%s339_s8 + $0x20] sm:$0xff]  ;;  %v1526_v7 = vld [vmem:[%s339_s8 + $0x28] sm:$0xff]  ;;  %511 = vst.msk [vmem:[#allocation5 + $0x28] sm:$0xff] %vm403_vm0, %v1442_v56 }
  0x13   : > { %v385_v8 = vpack.c.bf16 %v1522_v5, %v1515_v3  ;;  %v386_v9 = vpack.c.bf16 %v1526_v7, %v1524_v6  ;;  %v1533_v10 = vld [vmem:[%s339_s8 + $0x30] sm:$0xff]  ;;  %v1360_v11 = vld [vmem:[%s349_s11] sm:$0xff]   ;;  %v1361_v12 = vld [vmem:[%s349_s11 + $0x8] sm:$0xff]   ;;  %512 = vst.msk [vmem:[#allocation5 + $0x30] sm:$0xff] %vm403_vm0, %v1442_v56 }
  0x14   : > { %1290 = vmatprep.mubr.msk.bf16.mxu0 %vm403_vm0, %v384_v4  ;;  %v1537_v13 = vld [vmem:[%s339_s8 + $0x38] sm:$0xff]  ;;  %1298 = vmatprep.subr.bf16.mxu1 %v1360_v11  ;;  %v1362_v15 = vld [vmem:[%s349_s11 + $0x10] sm:$0xff]   ;;  %513 = vst.msk [vmem:[#allocation5 + $0x38] sm:$0xff] %vm403_vm0, %v1442_v56  ;;  %v1623_v4 = vld [vmem:[#allocation3 + $0x8] sm:$0xff] }
  0x15   : > { %1291 = vmatmul.mubr.msk.bf16.vlgmr.msra.gmra.mrb[0].mxu0 %vm403_vm0, %v385_v8  ;;  %1299 = vmatpush3.bf16.xpose.msra.mxu1 %v1360_v11  ;;  %v387_v14 = vpack.c.bf16 %v1537_v13, %v1533_v10  ;;  %v1363_v16 = vld [vmem:[%s349_s11 + $0x18] sm:$0xff]  }
  0x16   : > { %1294 = vmatprep.mubr.msk.bf16.mxu0 %vm403_vm0, %v386_v9  ;;  %1300 = vmatprep.subr.bf16.mxu1 %v1361_v12 }
  0x1d   : > { %1295 = vmatmul.mubr.msk.bf16.gmra.mrb[4].mxu0 %vm403_vm0, %v387_v14  ;;  %1301 = vmatpush3.bf16.xpose.msra.mxu1 %v1361_v12 }
  0x1e   : > { %1302 = vmatprep.subr.bf16.mxu1 %v1362_v15 }
  0x25   : > { %1303 = vmatpush3.bf16.xpose.msra.mxu1 %v1362_v15 }
  0x26   : > { %1304 = vmatprep.subr.bf16.mxu1 %v1363_v16 }
  0x2d   : > { %1305 = vmatpush3.bf16.xpose.msra.mxu1 %v1363_v16  ;;  %v1641_v16 = vld [vmem:[#allocation3 + $0x20] sm:$0xff] }
  0xe8   : > { %v1292_v17 = vpop.f32.mrb[0].mxu0 }
  0xe9   : > { %v450_v19 = vpop.f32.mrb[1].mxu0  ;;  %v459_v21 = vadd.f32 %v1292_v17, %v1243_v18 }
  0xea   : > { %v1293_v20 = vpop.f32.mrb[2].mxu0  ;;  %v451_v24 = vadd.f32 %v1243_v18, %v450_v19  ;;  %v1647_v19 = vld [vmem:[#allocation3 + $0x28] sm:$0xff] }
  0xeb   : > { %v462_v22 = vadd.f32 %v1293_v20, %v1243_v18  ;;  %v453_v23 = vpop.f32.mrb[3].mxu0 }
  0xec   : > { %v454_v25 = vadd.f32 %v1243_v18, %v453_v23  ;;  %v1364_v23 = vld [vmem:[%s1542_s14] sm:$0xff]  }
  0xed   : > { %v482_v26 = vpack.c.bf16 %v462_v22, %v459_v21  ;;  %v1653_v22 = vld [vmem:[#allocation3 + $0x30] sm:$0xff]  ;;  %1314 = vmatprep.subr.bf16.mxu0 %v1364_v23 }
  0xee   : > { %v481_v27 = vpack.c.bf16 %v454_v25, %v451_v24  ;;  %1315 = vmatpush3.bf16.msra.mxu0 %v1364_v23 }
  0xf0   : > { %v1296_v28 = vpop.f32.mrb[4].mxu0  ;;  %1306 = vmatprep.mubr.bf16.mxu1 %v481_v27  ;;  %v1663_v27 = vld [vmem:[#allocation3 + $0x38] sm:$0xff] }
  0xf1   : > { %v466_v29 = vpop.f32.mrb[5].mxu0  ;;  %1307 = vmatmul.mubr.bf16.vlgmr.msra.gmra.mrb[0].mxu1 %v482_v26  ;;  %v475_v31 = vadd.f32 %v1296_v28, %v1243_v18 }
  0xf2   : > { %v1297_v30 = vpop.f32.mrb[6].mxu0  ;;  %v467_v34 = vadd.f32 %v1243_v18, %v466_v29 }
  0xf3   : > { %v478_v32 = vadd.f32 %v1297_v30, %v1243_v18  ;;  %v469_v33 = vpop.f32.mrb[7].mxu0 }
  0xf4   : > { %v470_v35 = vadd.f32 %v1243_v18, %v469_v33 }
  0xf5   : > { %v484_v36 = vpack.c.bf16 %v478_v32, %v475_v31  ;;  %v1365_v31 = vld [vmem:[%s1542_s14 + $0x8] sm:$0xff]  }
  0xf6   : > { %v483_v37 = vpack.c.bf16 %v470_v35, %v467_v34  ;;  %1316 = vmatprep.subr.bf16.mxu0 %v1365_v31  ;;  %v1366_v35 = vld [vmem:[%s1542_s14 + $0x10] sm:$0xff]  }
  0xf7   : > { %1317 = vmatpush3.bf16.msra.mxu0 %v1365_v31 }
  0xf8   : > { %1310 = vmatprep.mubr.bf16.mxu1 %v483_v37  ;;  %1318 = vmatprep.subr.bf16.mxu0 %v1366_v35 }
  0xf9   : > { %1311 = vmatmul.mubr.bf16.gmra.mrb[4].mxu1 %v484_v36  ;;  %v1367_v36 = vld [vmem:[%s1542_s14 + $0x18] sm:$0xff]  }
  0xfb   : > { %1319 = vmatpush3.bf16.msra.mxu0 %v1366_v35 }
  0xfc   : > { %1320 = vmatprep.subr.bf16.mxu0 %v1367_v36 }
  0xff   : > { %1321 = vmatpush3.bf16.msra.mxu0 %v1367_v36 }
 0x1c4   : > { %v1558_v39 = vpop.f32.mrb[0].mxu1 }
 0x1c5   : > { %v1560_v40 = vpop.f32.mrb[1].mxu1  ;;  %v638_v41 = vsel %vm631_vm2, %v1558_v39, -inf }
 0x1c6   : > { %639 = vmax.xlane.f32.xlu1 %v638_v41  ;;  %v1564_v42 = vpop.f32.mrb[2].mxu1  ;;  %v632_v43 = vsel %vm631_vm2, %v1560_v40, -inf }
 0x1c7   : > { %633 = vmax.xlane.f32.xlu0 %v632_v43  ;;  %v1568_v44 = vpop.f32.mrb[3].mxu1  ;;  %v641_v45 = vsel %vm631_vm2, %v1564_v42, -inf }
 0x1c8   : > { %v635_v46 = vsel %vm631_vm2, %v1568_v44, -inf }
 0x1ca   : > { %642 = vmax.xlane.f32.xlu1 %v641_v45 }
 0x1cb   : > { %636 = vmax.xlane.f32.xlu0 %v635_v46 }
 0x1cc   : > { %v1574_v47 = vpop.f32.mrb[4].mxu1 }
 0x1cd   : > { %v1576_v48 = vpop.f32.mrb[5].mxu1  ;;  %v650_v53 = vsel %vm631_vm2, %v1574_v47, -inf }
 0x1ce   : > { %v1578_v49 = vpop.f32.mrb[6].mxu1  ;;  %v644_v50 = vsel %vm631_vm2, %v1576_v48, -inf }
 0x1cf   : > { %645 = vmax.xlane.f32.xlu0 %v644_v50  ;;  %v1582_v51 = vpop.f32.mrb[7].mxu1  ;;  %v653_v54 = vsel %vm631_vm2, %v1578_v49, -inf }
 0x1d0   : > { %v647_v52 = vsel %vm631_vm2, %v1582_v51, -inf }
 0x1d1   : > { %648 = vmax.xlane.f32.xlu1 %v647_v52 }
 0x1d3   : > { %651 = vmax.xlane.f32.xlu0 %v650_v53 }
 0x1d5   : > { %654 = vmax.xlane.f32.xlu1 %v653_v54 }
 0x253   : > { %v640_v59 = vpop.xlane.xlu1 %639 }
 0x254   : > { %v1611_v60 = vmax.f32 %v1606_v57, %v640_v59  ;;  %v634_v61 = vpop.xlane.xlu0 %633 }
 0x255   : > { %v1614_v62 = vmax.f32 %v1608_v58, %v634_v61 }
 0x256   : > { %v666_v0 = vsub.f32 %v1606_v57, %v1611_v60  ;;  %989 = vst.msk [vmem:[#allocation3 + $0x10] sm:$0xff] %vm489_vm1, %v1611_v60  ;;  %700 = vperm.xlu1 %1358, %v1611_v60  }
 0x257   : > { %v664_v8 = vsub.f32 %v1608_v58, %v1614_v62  ;;  %987 = vst.msk [vmem:[#allocation3] sm:$0xff] %vm489_vm1, %v1614_v62  ;;  %v643_v9 = vpop.xlane.xlu1 %642  ;;  %690 = vperm.xlu0 %1357, %v1614_v62  }
 0x258   : > { %v1631_v11 = vmax.f32 %v1616_v63, %v643_v9  ;;  %v637_v12 = vpop.xlane.xlu0 %636 }
 0x259   : > { %v1634_v14 = vmax.f32 %v1623_v4, %v637_v12 }
 0x25a   : > { %v667_v15 = vsub.f32 %v1616_v63, %v1631_v11  ;;  %990 = vst.msk [vmem:[#allocation3 + $0x18] sm:$0xff] %vm489_vm1, %v1631_v11  ;;  %705 = vperm.xlu1 %1358, %v1631_v11  }
 0x25b   : > { %v665_v17 = vsub.f32 %v1623_v4, %v1634_v14  ;;  %988 = vst.msk [vmem:[#allocation3 + $0x8] sm:$0xff] %vm489_vm1, %v1634_v14 }
 0x25c   : > { %v646_v18 = vpop.xlane.xlu0 %645 }
 0x25d   : > { %v1650_v20 = vmax.f32 %v1641_v16, %v646_v18 }
 0x25e   : > { %695 = vperm.xlu1 %1358, %v1634_v14   ;;  %v649_v21 = vpop.xlane.xlu1 %648 }
 0x25f   : > { %v668_v24 = vsub.f32 %v1641_v16, %v1650_v20  ;;  %991 = vst.msk [vmem:[#allocation3 + $0x20] sm:$0xff] %vm489_vm1, %v1650_v20  ;;  %v1661_v25 = vmax.f32 %v1647_v19, %v649_v21 }
 0x260   : > { %v652_v26 = vpop.xlane.xlu0 %651 }
 0x261   : > { %v669_v28 = vsub.f32 %v1647_v19, %v1661_v25  ;;  %992 = vst.msk [vmem:[#allocation3 + $0x28] sm:$0xff] %vm489_vm1, %v1661_v25  ;;  %v1670_v29 = vmax.f32 %v1653_v22, %v652_v26  ;;  %v680_v4 = vmul.f32 1.442695, %v668_v24  ;;  %v752_v19 = vld [vmem:[#allocation4] sm:$0xff] }
 0x262   : > { %v655_v30 = vpop.xlane.xlu1 %654 }
 0x263   : > { %v670_v32 = vsub.f32 %v1653_v22, %v1670_v29  ;;  %993 = vst.msk [vmem:[#allocation3 + $0x30] sm:$0xff] %vm489_vm1, %v1670_v29  ;;  %v1678_v33 = vmax.f32 %v1663_v27, %v655_v30  ;;  %720 = vperm.xlu1 %1358, %v1670_v29   ;;  %v682_v58 = vmul.f32 1.442695, %v669_v28  ;;  %v755_v28 = vld [vmem:[#allocation4 + $0x18] sm:$0xff] }
 0x265   : > { %v671_v34 = vsub.f32 %v1663_v27, %v1678_v33  ;;  %994 = vst.msk [vmem:[#allocation3 + $0x38] sm:$0xff] %vm489_vm1, %v1678_v33  ;;  %v684_v57 = vmul.f32 1.442695, %v670_v32 }
 0x267   : > { %710 = vperm.xlu1 %1358, %v1650_v20   ;;  %v686_v60 = vmul.f32 1.442695, %v671_v34 }
 0x26b   : > { %715 = vperm.xlu1 %1358, %v1661_v25  }
 0x26f   : > { %725 = vperm.xlu1 %1358, %v1678_v33   ;;  %v753_v33 = vld [vmem:[#allocation4 + $0x8] sm:$0xff] }
 0x2d5   : > { %v701_v37 = vpop.permute.xlu1 %700 }
 0x2d6   : > { %v730_v38 = vsub.f32 %v1558_v39, %v701_v37  ;;  %v691_v41 = vpop.permute.xlu0 %690 }
 0x2d7   : > { %v728_v43 = vsub.f32 %v1560_v40, %v691_v41 }
 0x2d8   : > { %v740_v45 = vmul.f32 1.442695, %v730_v38 }
 0x2d9   : > { %v736_v46 = vmul.f32 1.442695, %v728_v43  ;;  %v706_v50 = vpop.permute.xlu1 %705 }
 0x2da   : > { %1368 = vpow2.f32 %v740_v45  ;;  %v731_v52 = vsub.f32 %v1564_v42, %v706_v50 }
 0x2db   : > { %1370 = vpow2.f32 %v736_v46 }
 0x2dc   : > { %v742_v53 = vmul.f32 1.442695, %v731_v52 }
 0x2dd   : > { %v696_v54 = vpop.permute.xlu1 %695 }
 0x2de   : > { %1372 = vpow2.f32 %v742_v53  ;;  %v729_v55 = vsub.f32 %v1568_v44, %v696_v54 }
 0x2e0   : > { %v738_v56 = vmul.f32 1.442695, %v729_v55 }
 0x2e2   : > { %1374 = vpow2.f32 %v738_v56  ;;  %v721_v59 = vpop.permute.xlu1 %720 }
 0x2e3   : > { %v734_v9 = vsub.f32 %v1574_v47, %v721_v59  ;;  %v674_v59 = vmul.f32 1.442695, %v665_v17  ;;  %v754_v17 = vld [vmem:[#allocation4 + $0x10] sm:$0xff] }
 0x2e4   : > { %v1369_v61 = vpop.eup %1368 }
 0x2e5   : > { %v1371_v39 = vpop.eup %1370  ;;  %v774_v40 = vsel %vm631_vm2, %v1369_v61, 0.0  ;;  %v748_v26 = vmul.f32 1.442695, %v734_v9  ;;  %v678_v9 = vmul.f32 1.442695, %v667_v15 }
 0x2e6   : > { %775 = vadd.xlane.f32.xlu0 %v774_v40  ;;  %v711_v12 = vpop.permute.xlu1 %710  ;;  %v768_v18 = vsel %vm631_vm2, %v1371_v39, 0.0 }
 0x2e7   : > { %v732_v42 = vsub.f32 %v1576_v48, %v711_v12  ;;  %769 = vadd.xlane.f32.xlu1 %v768_v18 }
 0x2e8   : > { %v1373_v21 = vpop.eup %1372 }
 0x2e9   : > { %v866_v23 = vpack.c.bf16 %v1373_v21, %v1369_v61  ;;  %v744_v44 = vmul.f32 1.442695, %v732_v42  ;;  %v777_v30 = vsel %vm631_vm2, %v1373_v21, 0.0  ;;  %v672_v61 = vmul.f32 1.442695, %v664_v8 }
 0x2ea   : > { %v716_v31 = vpop.permute.xlu1 %715 }
 0x2eb   : > { %1376 = vpow2.f32 %v744_v44  ;;  %v733_v35 = vsub.f32 %v1582_v51, %v716_v31  ;;  %778 = vadd.xlane.f32.xlu1 %v777_v30 }
 0x2ec   : > { %v1375_v47 = vpop.eup %1374  ;;  %1378 = vpow2.f32 %v748_v26  ;;  %v756_v26 = vld [vmem:[#allocation4 + $0x20] sm:$0xff] }
 0x2ed   : > { %v746_v36 = vmul.f32 1.442695, %v733_v35  ;;  %v771_v37 = vsel %vm631_vm2, %v1375_v47, 0.0  ;;  %v865_v38 = vpack.c.bf16 %v1375_v47, %v1371_v39  ;;  %v676_v39 = vmul.f32 1.442695, %v666_v0  ;;  %v758_v35 = vld [vmem:[#allocation4 + $0x30] sm:$0xff] }
 0x2ee   : > { %772 = vadd.xlane.f32.xlu0 %v771_v37  ;;  %v726_v48 = vpop.permute.xlu1 %725  ;;  %v757_v47 = vld [vmem:[#allocation4 + $0x28] sm:$0xff] }
 0x2ef   : > { %1380 = vpow2.f32 %v746_v36  ;;  %v735_v41 = vsub.f32 %v1578_v49, %v726_v48  ;;  %1322 = vmatprep.mubr.msk.bf16.mxu0 %vm631_vm2, %v865_v38 }
 0x2f0   : > { %1323 = vmatmul.mubr.msk.bf16.vlgmr.msra.gmra.mrb[8].mxu0 %vm631_vm2, %v866_v23 }
 0x2f1   : > { %v750_v43 = vmul.f32 1.442695, %v735_v41 }
 0x2f3   : > { %1382 = vpow2.f32 %v750_v43 }
 0x2f4   : > { %1384 = vpow2.f32 %v674_v59 }
 0x2f5   : > { %v1377_v45 = vpop.eup %1376  ;;  %1386 = vpow2.f32 %v672_v61 }
 0x2f6   : > { %v780_v51 = vsel %vm631_vm2, %v1377_v45, 0.0  ;;  %v1379_v46 = vpop.eup %1378  ;;  %1388 = vpow2.f32 %v676_v39 }
 0x2f7   : > { %781 = vadd.xlane.f32.xlu0 %v780_v51  ;;  %v786_v52 = vsel %vm631_vm2, %v1379_v46, 0.0  ;;  %1390 = vpow2.f32 %v678_v9  ;;  %v759_v51 = vld [vmem:[#allocation4 + $0x38] sm:$0xff] }
 0x2f8   : > { %1392 = vpow2.f32 %v680_v4 }
 0x2f9   : > { %v1381_v50 = vpop.eup %1380  ;;  %1394 = vpow2.f32 %v682_v58 }
 0x2fa   : > { %v783_v53 = vsel %vm631_vm2, %v1381_v50, 0.0  ;;  %v867_v54 = vpack.c.bf16 %v1381_v50, %v1377_v45  ;;  %1396 = vpow2.f32 %v684_v57 }
 0x2fb   : > { %787 = vadd.xlane.f32.xlu0 %v786_v52  ;;  %784 = vadd.xlane.f32.xlu1 %v783_v53  ;;  %1398 = vpow2.f32 %v686_v60 }
 0x2fc   : > { %1326 = vmatprep.mubr.msk.bf16.mxu0 %vm631_vm2, %v867_v54 }
 0x2fd   : > { %v1383_v49 = vpop.eup %1382 }
 0x2fe   : > { %v789_v55 = vsel %vm631_vm2, %v1383_v49, 0.0  ;;  %v868_v56 = vpack.c.bf16 %v1383_v49, %v1379_v46  ;;  %v1385_v62 = vpop.eup %1384 }
 0x2ff   : > { %790 = vadd.xlane.f32.xlu1 %v789_v55  ;;  %v1387_v63 = vpop.eup %1386  ;;  %v761_v12 = vmul.f32 %v1385_v62, %v753_v33 }
 0x300   : > { %1327 = vmatmul.mubr.msk.bf16.gmra.mrb[12].mxu0 %vm631_vm2, %v868_v56  ;;  %v1389_v0 = vpop.eup %1388  ;;  %v760_v24 = vmul.f32 %v1387_v63, %v752_v19 }
 0x301   : > { %v1391_v8 = vpop.eup %1390  ;;  %v762_v20 = vmul.f32 %v1389_v0, %v754_v17 }
 0x302   : > { %v1393_v11 = vpop.eup %1392  ;;  %v763_v32 = vmul.f32 %v1391_v8, %v755_v28 }
 0x303   : > { %v1395_v14 = vpop.eup %1394  ;;  %v764_v30 = vmul.f32 %v1393_v11, %v756_v26 }
 0x304   : > { %v1397_v15 = vpop.eup %1396  ;;  %v765_v48 = vmul.f32 %v1395_v14, %v757_v47 }
 0x305   : > { %v1399_v16 = vpop.eup %1398  ;;  %v766_v38 = vmul.f32 %v1397_v15, %v758_v35 }
 0x306   : > { %v767_v52 = vmul.f32 %v1399_v16, %v759_v51 }
 0x310   : > { %824 = vperm.xlu1 %1358, %v1385_v62  }
 0x311   : > { %819 = vperm.xlu0 %1357, %v1387_v63  }
 0x314   : > { %829 = vperm.xlu1 %1358, %v1389_v0   ;;  %v811_v0 = vld [vmem:[#allocation5 + $0x10] sm:$0xff] }
 0x315   : > { %834 = vperm.xlu0 %1357, %v1391_v8  }
 0x318   : > { %839 = vperm.xlu1 %1358, %v1393_v11   ;;  %v809_v11 = vld [vmem:[#allocation5] sm:$0xff] }
 0x319   : > { %844 = vperm.xlu0 %1357, %v1395_v14   ;;  %v812_v14 = vld [vmem:[#allocation5 + $0x18] sm:$0xff] }
 0x31c   : > { %849 = vperm.xlu1 %1358, %v1397_v15  }
 0x31d   : > { %854 = vperm.xlu0 %1357, %v1399_v16   ;;  %v810_v16 = vld [vmem:[#allocation5 + $0x8] sm:$0xff] }
 0x373   : > { %v776_v22 = vpop.xlane.xlu0 %775 }
 0x374   : > { %v794_v25 = vadd.f32 %v776_v22, %v762_v20  ;;  %v770_v27 = vpop.xlane.xlu1 %769 }
 0x375   : > { %v792_v29 = vadd.f32 %v770_v27, %v760_v24 }
 0x376   : > { %803 = vst.msk [vmem:[#allocation4 + $0x10] sm:$0xff] %vm489_vm1, %v794_v25 }
 0x377   : > { %801 = vst.msk [vmem:[#allocation4] sm:$0xff] %vm489_vm1, %v792_v29 }
 0x378   : > { %v779_v34 = vpop.xlane.xlu1 %778 }
 0x379   : > { %v795_v40 = vadd.f32 %v779_v34, %v763_v32 }
 0x37b   : > { %804 = vst.msk [vmem:[#allocation4 + $0x18] sm:$0xff] %vm489_vm1, %v795_v40  ;;  %v773_v18 = vpop.xlane.xlu0 %772 }
 0x37c   : > { %v793_v42 = vadd.f32 %v773_v18, %v761_v12  ;;  %v815_v18 = vld [vmem:[#allocation5 + $0x30] sm:$0xff] }
 0x37d   : > { %v1000_v21 = vld [vmem:[#allocation4 + $0x10] sm:$0xff] }
 0x37e   : > { %802 = vst.msk [vmem:[#allocation4 + $0x8] sm:$0xff] %vm489_vm1, %v793_v42  ;;  %1400 = vrcp.f32 %v1000_v21  ;;  %v998_v23 = vld [vmem:[#allocation4] sm:$0xff] }
 0x37f   : > { %1402 = vrcp.f32 %v998_v23  ;;  %v813_v21 = vld [vmem:[#allocation5 + $0x20] sm:$0xff]  ;;  %v816_v23 = vld [vmem:[#allocation5 + $0x38] sm:$0xff] }
 0x382   : > { %v1001_v44 = vld [vmem:[#allocation4 + $0x18] sm:$0xff] }
 0x383   : > { %1404 = vrcp.f32 %v1001_v44  ;;  %v814_v44 = vld [vmem:[#allocation5 + $0x28] sm:$0xff] }
 0x384   : > { %v782_v31 = vpop.xlane.xlu0 %781 }
 0x385   : > { %v796_v36 = vadd.f32 %v782_v31, %v764_v30  ;;  %v999_v37 = vld [vmem:[#allocation4 + $0x8] sm:$0xff] }
 0x386   : > { %1406 = vrcp.f32 %v999_v37 }
 0x387   : > { %805 = vst.msk [vmem:[#allocation4 + $0x20] sm:$0xff] %vm489_vm1, %v796_v36 }
 0x388   : > { %v1401_v41 = vpop.eup %1400  ;;  %v788_v43 = vpop.xlane.xlu0 %787 }
 0x389   : > { %v785_v45 = vpop.xlane.xlu1 %784  ;;  %v798_v46 = vadd.f32 %v788_v43, %v766_v38  ;;  %1034 = vperm.xlu1 %1358, %v1401_v41   ;;  %v1403_v53 = vpop.eup %1402 }
 0x38a   : > { %v797_v50 = vadd.f32 %v785_v45, %v765_v48 }
 0x38b   : > { %807 = vst.msk [vmem:[#allocation4 + $0x30] sm:$0xff] %vm489_vm1, %v798_v46 }
 0x38c   : > { %806 = vst.msk [vmem:[#allocation4 + $0x28] sm:$0xff] %vm489_vm1, %v797_v50  ;;  %v1071_v50 = vstv %s1070_s17 }
 0x38d   : > { %v791_v54 = vpop.xlane.xlu1 %790  ;;  %v1405_v49 = vpop.eup %1404  ;;  %1024 = vperm.xlu1 %1358, %v1403_v53  }
 0x38e   : > { %v799_v55 = vadd.f32 %v791_v54, %v767_v52  ;;  %1039 = vperm.xlu0 %1357, %v1405_v49   ;;  %v1002_v56 = vld [vmem:[#allocation4 + $0x20] sm:$0xff] }
 0x38f   : > { %1408 = vrcp.f32 %v1002_v56 }
 0x390   : > { %808 = vst.msk [vmem:[#allocation4 + $0x38] sm:$0xff] %vm489_vm1, %v799_v55  ;;  %v1407_v59 = vpop.eup %1406  ;;  %v820_v63 = vpop.permute.xlu0 %819 }
 0x391   : > { %v825_v62 = vpop.permute.xlu1 %824  ;;  %v857_v19 = vmul.f32 %v820_v63, %v809_v11 }
 0x392   : > { %1029 = vperm.xlu0 %1357, %v1407_v59   ;;  %v1004_v61 = vld [vmem:[#allocation4 + $0x30] sm:$0xff]  ;;  %v858_v27 = vmul.f32 %v825_v62, %v810_v16 }
 0x393   : > { %v1003_v39 = vld [vmem:[#allocation4 + $0x28] sm:$0xff]  ;;  %1410 = vrcp.f32 %v1004_v61 }
 0x394   : > { %1412 = vrcp.f32 %v1003_v39  ;;  %v835_v15 = vpop.permute.xlu0 %834 }
 0x395   : > { %v830_v8 = vpop.permute.xlu1 %829  ;;  %v860_v22 = vmul.f32 %v835_v15, %v812_v14 }
 0x396   : > { %v859_v17 = vmul.f32 %v830_v8, %v811_v0 }
 0x397   : > { %v1005_v9 = vld [vmem:[#allocation4 + $0x38] sm:$0xff] }
 0x398   : > { %1414 = vrcp.f32 %v1005_v9  ;;  %v845_v12 = vpop.permute.xlu0 %844 }
 0x399   : > { %v1409_v4 = vpop.eup %1408  ;;  %v840_v40 = vpop.permute.xlu1 %839  ;;  %v862_v38 = vmul.f32 %v845_v12, %v814_v44 }
 0x39a   : > { %1044 = vperm.xlu1 %1358, %v1409_v4   ;;  %v861_v31 = vmul.f32 %v840_v40, %v813_v21 }
 0x39c   : > { %v855_v26 = vpop.permute.xlu0 %854 }
 0x39d   : > { %v1411_v58 = vpop.eup %1410  ;;  %v850_v42 = vpop.permute.xlu1 %849  ;;  %v864_v47 = vmul.f32 %v855_v26, %v816_v23 }
 0x39e   : > { %v1413_v57 = vpop.eup %1412  ;;  %1054 = vperm.xlu1 %1358, %v1411_v58   ;;  %v863_v30 = vmul.f32 %v850_v42, %v815_v18 }
 0x39f   : > { %1049 = vperm.xlu0 %1357, %v1413_v57  }
 0x3a2   : > { %v1415_v60 = vpop.eup %1414 }
 0x3a3   : > { %1059 = vperm.xlu0 %1357, %v1415_v60  }
 0x3c3   : > { %v1324_v20 = vpop.f32.mrb[8].mxu0 }
 0x3c4   : > { %v972_v24 = vadd.f32 %v1324_v20, %v859_v17  ;;  %v939_v25 = vpop.f32.mrb[9].mxu0 }
 0x3c5   : > { %v970_v28 = vadd.f32 %v939_v25, %v857_v19  ;;  %v1325_v29 = vpop.f32.mrb[10].mxu0 }
 0x3c6   : > { %981 = vst.msk [vmem:[#allocation5 + $0x10] sm:$0xff] %vm403_vm0, %v972_v24  ;;  %v973_v32 = vadd.f32 %v1325_v29, %v860_v22  ;;  %v942_v33 = vpop.f32.mrb[11].mxu0 }
 0x3c7   : > { %979 = vst.msk [vmem:[#allocation5] sm:$0xff] %vm403_vm0, %v970_v28  ;;  %v971_v34 = vadd.f32 %v942_v33, %v858_v27 }
 0x3c8   : > { %982 = vst.msk [vmem:[#allocation5 + $0x18] sm:$0xff] %vm403_vm0, %v973_v32 }
 0x3c9   : > { %980 = vst.msk [vmem:[#allocation5 + $0x8] sm:$0xff] %vm403_vm0, %v971_v34 }
 0x3cd   : > { %v1016_v46 = vld [vmem:[#allocation5 + $0x10] sm:$0xff] }
 0x3ce   : > { %v1014_v49 = vld [vmem:[#allocation5] sm:$0xff] }
 0x3cf   : > { %v1017_v61 = vld [vmem:[#allocation5 + $0x18] sm:$0xff] }
 0x3d0   : > { %v1015_v62 = vld [vmem:[#allocation5 + $0x8] sm:$0xff] }
 0x3d3   : > { %v1328_v35 = vpop.f32.mrb[12].mxu0 }
 0x3d4   : > { %v976_v36 = vadd.f32 %v1328_v35, %v863_v30  ;;  %v955_v37 = vpop.f32.mrb[13].mxu0 }
 0x3d5   : > { %v974_v48 = vadd.f32 %v955_v37, %v861_v31  ;;  %v1329_v41 = vpop.f32.mrb[14].mxu0 }
 0x3d6   : > { %985 = vst.msk [vmem:[#allocation5 + $0x30] sm:$0xff] %vm403_vm0, %v976_v36  ;;  %v977_v43 = vadd.f32 %v1329_v41, %v864_v47  ;;  %v958_v45 = vpop.f32.mrb[15].mxu0 }
 0x3d7   : > { %983 = vst.msk [vmem:[#allocation5 + $0x20] sm:$0xff] %vm403_vm0, %v974_v48  ;;  %v975_v51 = vadd.f32 %v958_v45, %v862_v38 }
 0x3d8   : > { %986 = vst.msk [vmem:[#allocation5 + $0x38] sm:$0xff] %vm403_vm0, %v977_v43 }
 0x3d9   : > { %984 = vst.msk [vmem:[#allocation5 + $0x28] sm:$0xff] %vm403_vm0, %v975_v51 }
 0x3de   : > { %v1018_v11 = vld [vmem:[#allocation5 + $0x20] sm:$0xff] }
 0x3df   : > { %v1021_v28 = vld [vmem:[#allocation5 + $0x38] sm:$0xff] }
 0x3e0   : > { %v1019_v19 = vld [vmem:[#allocation5 + $0x28] sm:$0xff] }
 0x408   : > { %v1035_v52 = vpop.permute.xlu1 %1034 }
 0x409   : > { %v1064_v53 = vmul.f32 %v1035_v52, %v1016_v46 }
 0x40b   : > { %v1074_v54 = vmul.f32 %v1071_v50, %v1064_v53 }
 0x40c   : > { %v1025_v55 = vpop.permute.xlu1 %1024 }
 0x40d   : > { %v1090_v56 = vadd.f32 %v1074_v54, %v1515_v3  ;;  %v1062_v59 = vmul.f32 %v1025_v55, %v1014_v49  ;;  %v1040_v39 = vpop.permute.xlu0 %1039 }
 0x40e   : > { %v1065_v9 = vmul.f32 %v1040_v39, %v1017_v61 }
 0x40f   : > { %1098 = vst.msk [vmem:[%s1755_s20 + $0x10] sm:$0xff] %vm403_vm0, %v1090_v56  ;;  %v1072_v4 = vmul.f32 %v1071_v50, %v1062_v59 }
 0x410   : > { %v1075_v58 = vmul.f32 %v1071_v50, %v1065_v9 }
 0x411   : > { %v1088_v57 = vadd.f32 %v1072_v4, %v1511_v1  ;;  %v1030_v60 = vpop.permute.xlu0 %1029  ;;  %v1020_v1 = vld [vmem:[#allocation5 + $0x30] sm:$0xff] }
 0x412   : > { %v1091_v63 = vadd.f32 %v1075_v58, %v1522_v5  ;;  %v1063_v0 = vmul.f32 %v1030_v60, %v1015_v62 }
 0x413   : > { %1096 = vst.msk [vmem:[%s1755_s20] sm:$0xff] %vm403_vm0, %v1088_v57 }
 0x414   : > { %1099 = vst.msk [vmem:[%s1755_s20 + $0x18] sm:$0xff] %vm403_vm0, %v1091_v63  ;;  %v1073_v3 = vmul.f32 %v1071_v50, %v1063_v0 }
 0x416   : > { %v1089_v8 = vadd.f32 %v1073_v3, %v1513_v2 }
 0x418   : > { %1097 = vst.msk [vmem:[%s1755_s20 + $0x8] sm:$0xff] %vm403_vm0, %v1089_v8 }
 0x419   : > { %v1045_v14 = vpop.permute.xlu1 %1044 }
 0x41a   : > { %v1066_v15 = vmul.f32 %v1045_v14, %v1018_v11 }
 0x41c   : > { %v1076_v16 = vmul.f32 %v1071_v50, %v1066_v15 }
 0x41d   : > { %v1055_v17 = vpop.permute.xlu1 %1054 }
 0x41e   : > { %v1092_v5 = vadd.f32 %v1076_v16, %v1524_v6  ;;  %v1050_v20 = vpop.permute.xlu0 %1049  ;;  %v1068_v22 = vmul.f32 %v1055_v17, %v1020_v1 }
 0x41f   : > { %v1067_v24 = vmul.f32 %v1050_v20, %v1019_v19 }
 0x420   : > { %1100 = vst.msk [vmem:[%s1755_s20 + $0x20] sm:$0xff] %vm403_vm0, %v1092_v5  ;;  %v1078_v2 = vmul.f32 %v1071_v50, %v1068_v22 }
 0x421   : > { %v1077_v25 = vmul.f32 %v1071_v50, %v1067_v24 }
 0x422   : > { %v1094_v27 = vadd.f32 %v1078_v2, %v1533_v10  ;;  %v1060_v29 = vpop.permute.xlu0 %1059 }
 0x423   : > { %v1093_v32 = vadd.f32 %v1077_v25, %v1526_v7  ;;  %v1069_v33 = vmul.f32 %v1060_v29, %v1021_v28 }
 0x424   : > { %1102 = vst.msk [vmem:[%s1755_s20 + $0x30] sm:$0xff] %vm403_vm0, %v1094_v27 }
 0x425   : > { %1101 = vst.msk [vmem:[%s1755_s20 + $0x28] sm:$0xff] %vm403_vm0, %v1093_v32  ;;  %v1079_v6 = vmul.f32 %v1071_v50, %v1069_v33 }
 0x427   : > { %v1095_v34 = vadd.f32 %v1079_v6, %v1537_v13 }
 0x429   : > { %1103 = vst.msk [vmem:[%s1755_s20 + $0x38] sm:$0xff] %vm403_vm0, %v1095_v34 }
 0x42a PF: > { %s17_s25 = sadd.s32 1, %s1438_s25   ;;  %s1797_s23 = smov %s1434_s24 }
 0x42b   : > { %p14_p5 = scmp.ge.s32.totalorder %s17_s25, 4   ;;  %s1798_s24 = smov %s1800_s5 }
 0x42d   :  { %16 = sbr.rel (!%p14_p5) target bundleno = 2 (0x2), region = 88 }

</bundles_post_ra>
